<compile_context>
chip_gen: v5e
topology: v5e:2x2
jax: 0.10.0
libtpu: 0.0.40
codegen_flags: <defaults>
</compile_context>

<pallas_src>
import functools

import jax
import jax.numpy as jnp
from jax import lax
from jax.experimental import pallas as pl
from jax.experimental.pallas import tpu as pltpu


def _round_up(x, m):
    return ((x + m - 1) // m) * m


# ---------------------------------------------------------------------------
# Stage A: nodevectors (single grid step; O(N*dim) work).
# ---------------------------------------------------------------------------
def _nodevec_kernel(e1_ref, e2_ref, w1_ref, b1_ref, w2_ref, b2_ref,
                    r_ref, ct_ref, *, alpha, rows, cols):
    # w/b already carry one factor of alpha (folded in the wrapper), so
    # x = e @ (alpha*w) + alpha*b == alpha * lin(e).
    x1 = jnp.dot(e1_ref[...], w1_ref[...],
                 preferred_element_type=jnp.float32) + b1_ref[...]
    x2 = jnp.dot(e2_ref[...], w2_ref[...],
                 preferred_element_type=jnp.float32) + b2_ref[...]
    nv1s = alpha * jnp.tanh(x1)          # second alpha folded into nv1
    nv2 = jnp.tanh(x2)
    # R (rows, 2*dim) and Ct = C^T (2*dim, cols) with C = [nv2, -nv1s], so that
    # R @ Ct = nv1s @ nv2^T - nv2 @ nv1s^T = alpha * a.
    # Ct is written pre-transposed (lane-dense along N) so stage B is a plain
    # (tm, K) @ (K, tn) matmul with no in-loop transpose.
    r_ref[...] = jnp.concatenate(
        [nv1s[:rows], nv2[:rows]], axis=1).astype(r_ref.dtype)
    ct_ref[...] = jnp.concatenate(
        [nv2[:cols], -nv1s[:cols]], axis=1).T.astype(ct_ref.dtype)


# ---------------------------------------------------------------------------
# Stage B: (tm, tn) row-slab of adj = relu(tanh(alpha*(nv1 nv2^T - nv2 nv1^T)))
# via one fused K=2*dim matmul.
# ---------------------------------------------------------------------------
def _adj_slab_kernel(r_ref, ct_ref, o_ref):
    a = jnp.dot(r_ref[...], ct_ref[...], preferred_element_type=jnp.float32)
    o_ref[...] = jnp.maximum(jnp.tanh(a), 0.0)


def graph_adj_pallas(e1, e2, w1, b1, w2, b2, alpha, *,
                     mxu_dtype=jnp.bfloat16, row_tile=256, col_tile=8192):
    """Dense (pre-topk) adjacency via two pallas_calls.

    e1, e2: (N, dim) gathered embeddings.  w*: (dim, dim), b*: (1, dim).
    mxu_dtype: dtype of MXU operands (bf16 default, f32 for exactness);
    accumulation and all elementwise math stay f32.
    """
    n, dim = e1.shape
    alpha = float(alpha)

    # Row padding: multiple of 8 only (sublane rule); an even number of row
    # slabs so both TensorCores get work on v7x megacore.
    n8 = _round_up(n, 8)
    row_steps = pl.cdiv(n8, row_tile)
    if row_steps > 1 and row_steps % 2:
        row_steps += 1
    tm = _round_up(pl.cdiv(n8, row_steps), 8)
    rows = row_steps * tm

    # Column padding: multiple of 128 (lane-dense unmasked stores).  A column
    # grid axis only appears when a full row slab would not fit comfortably.
    cols = _round_up(n, 128)
    col_steps = pl.cdiv(cols, col_tile)
    tn = _round_up(pl.cdiv(cols, col_steps), 128)
    cols = col_steps * tn

    n_e = max(rows, cols)

    def pad_rows(x):
        return x if x.shape[0] == n_e else jnp.pad(
            x, ((0, n_e - x.shape[0]), (0, 0)))

    # TODO(synk): for very large N (>~100k) stage A's full-extent blocks won't
    # fit VMEM; row-block stage A and stream Ct in stage B instead.
    e1p = pad_rows(e1).astype(mxu_dtype)
    e2p = pad_rows(e2).astype(mxu_dtype)
    # Fold one alpha into the (static) linear params once — O(dim^2).
    w1a = (alpha * w1).astype(mxu_dtype)
    w2a = (alpha * w2).astype(mxu_dtype)
    b1a = (alpha * b1).astype(jnp.float32)
    b2a = (alpha * b2).astype(jnp.float32)

    # ---- stage A: nodevectors, single grid step ----
    def full(shape):
        return pl.BlockSpec(shape, lambda i: (0, 0))

    r_arr, ct_arr = pl.pallas_call(
        functools.partial(_nodevec_kernel, alpha=alpha, rows=rows, cols=cols),
        out_shape=(jax.ShapeDtypeStruct((rows, 2 * dim), mxu_dtype),
                   jax.ShapeDtypeStruct((2 * dim, cols), mxu_dtype)),
        grid=(1,),
        in_specs=[full((n_e, dim)), full((n_e, dim)),
                  full((dim, dim)), full((1, dim)),
                  full((dim, dim)), full((1, dim))],
        out_specs=(full((rows, 2 * dim)), full((2 * dim, cols))),
        compiler_params=pltpu.CompilerParams(
            dimension_semantics=("arbitrary",)),
    )(e1p, e2p, w1a, b1a, w2a, b2a)

    # ---- stage B: row-slab adjacency, nodevectors effectively VMEM-resident ----
    itemsize = jnp.dtype(mxu_dtype).itemsize
    vmem_need = 2 * (tm * 2 * dim * itemsize        # R slab (double-buffered)
                     + 2 * dim * tn * itemsize      # Ct slab
                     + tm * tn * 4)                 # f32 output slab
    # Explicit limit: > default scoped (16/32 MiB), < v7x physical 64 MiB.
    vmem_limit = int(min(max(vmem_need + (8 << 20), 24 << 20), 56 << 20))

    adj_pad = pl.pallas_call(
        _adj_slab_kernel,
        out_shape=jax.ShapeDtypeStruct((rows, cols), jnp.float32),
        grid=(row_steps, col_steps),
        in_specs=[pl.BlockSpec((tm, 2 * dim), lambda i, j: (i, 0)),
                  pl.BlockSpec((2 * dim, tn), lambda i, j: (0, j))],
        out_specs=pl.BlockSpec((tm, tn), lambda i, j: (i, j)),
        compiler_params=pltpu.CompilerParams(
            dimension_semantics=("parallel", "parallel"),
            vmem_limit_bytes=vmem_limit),
    )(r_arr, ct_arr)

    return adj_pad[:n, :n]


def graph_constructor_forward(idx, params, k, alpha, *,
                              mxu_dtype=jnp.bfloat16):
    """Full forward: gather (glue) -> Pallas kernels -> top-k mask (glue)."""
    # Embedding gather as XLA glue — O(N*dim), negligible vs the O(N^2) kernel.
    # TODO(synk): fuse the gather via PrefetchScalarGridSpec + pl.Element row
    # index_maps if it ever shows up on the profile.
    e1 = params["emb1"][idx]
    e2 = params["emb2"][idx]

    adj = graph_adj_pallas(e1, e2,
                           params["w1"], params["b1"],
                           params["w2"], params["b2"],
                           alpha, mxu_dtype=mxu_dtype)

    # Exact torch scatter_ semantics (index-based top-k, tie-break by index).
    # TODO(synk): fuse an exact-index top-k mask into stage B (k iterative
    # argmax passes per row slab, with padded columns masked <= 0 first) to
    # remove the remaining N^2 HBM passes done here in JAX glue.
    n = idx.shape[0]
    _, t1 = lax.top_k(adj, k)
    mask = jnp.zeros((n, n), adj.dtype).at[jnp.arange(n)[:, None], t1].set(1.0)
    return adj * mask


def _init_params(key, nnodes, dim):
    k1, k2, k3, k4, k5, k6 = jax.random.split(key, 6)
    scale = 1.0 / jnp.sqrt(dim)
    return {
        # nn.Embedding default init ~ N(0, 1)
        "emb1": jax.random.normal(k1, (nnodes, dim), jnp.float32),
        "emb2": jax.random.normal(k2, (nnodes, dim), jnp.float32),
        # nn.Linear: uniform(-1/sqrt(in), 1/sqrt(in)); stored as (in, out)
        "w1": jax.random.uniform(k3, (dim, dim), jnp.float32, -scale, scale),
        "b1": jax.random.uniform(k4, (1, dim), jnp.float32, -scale, scale),
        "w2": jax.random.uniform(k5, (dim, dim), jnp.float32, -scale, scale),
        "b2": jax.random.uniform(k6, (1, dim), jnp.float32, -scale, scale),
    }


def _reference_forward(idx, params, k, alpha):
    """Pure-JAX f32 reference mirroring the PyTorch module."""
    e1 = params["emb1"][idx]
    e2 = params["emb2"][idx]
    nv1 = jnp.tanh(alpha * (e1 @ params["w1"] + params["b1"]))
    nv2 = jnp.tanh(alpha * (e2 @ params["w2"] + params["b2"]))
    a = nv1 @ nv2.T - nv2 @ nv1.T
    adj = jax.nn.relu(jnp.tanh(alpha * a))
    n = idx.shape[0]
    _, t1 = lax.top_k(adj, k)
    mask = jnp.zeros((n, n)).at[jnp.arange(n)[:, None], t1].set(1.0)
    return adj * mask


def _reference_dense(idx, params, alpha, mxu_dtype):
    """Dense adjacency with the same casts / fused-K structure as the kernel."""
    e1 = params["emb1"][idx].astype(mxu_dtype)
    e2 = params["emb2"][idx].astype(mxu_dtype)
    w1a = (alpha * params["w1"]).astype(mxu_dtype)
    w2a = (alpha * params["w2"]).astype(mxu_dtype)
    b1a = alpha * params["b1"]
    b2a = alpha * params["b2"]
    x1 = jnp.dot(e1, w1a, preferred_element_type=jnp.float32) + b1a
    x2 = jnp.dot(e2, w2a, preferred_element_type=jnp.float32) + b2a
    nv1s = alpha * jnp.tanh(x1)
    nv2 = jnp.tanh(x2)
    r = jnp.concatenate([nv1s, nv2], axis=1).astype(mxu_dtype)
    c = jnp.concatenate([nv2, -nv1s], axis=1).astype(mxu_dtype)
    a = jnp.dot(r, c.T, preferred_element_type=jnp.float32)
    return jnp.maximum(jnp.tanh(a), 0.0)


if __name__ == "__main__":
    nnodes = 20   # embedding table size
    n = 16        # number of nodes selected by idx
    dim = 32
    k = 4
    alpha = 3.0

    key = jax.random.PRNGKey(0)
    pkey, ikey = jax.random.split(key)
    params = _init_params(pkey, nnodes, dim)

    # idx: a subset/permutation of node ids, like the PyTorch module receives.
    idx = jax.random.permutation(ikey, nnodes)[:n].astype(jnp.int32)

    # f32 MXU-operand path: PyTorch-semantics check (tight tolerance).
    adj_f32 = graph_constructor_forward(idx, params, k, alpha,
                                        mxu_dtype=jnp.float32)
    adj_f32 = jax.block_until_ready(adj_f32)
    ref = _reference_forward(idx, params, k, alpha)
    assert adj_f32.shape == (n, n)
    assert jnp.allclose(adj_f32, ref, atol=1e-4, rtol=1e-4), \
        "f32 mismatch vs reference"

    # Default bf16 MXU-operand path (f32 accumulation / elementwise): compare
    # the dense adjacency against a JAX reference with identical casts.
    e1 = params["emb1"][idx]
    e2 = params["emb2"][idx]
    adj_bf16 = graph_adj_pallas(e1, e2,
                                params["w1"], params["b1"],
                                params["w2"], params["b2"], alpha)
    adj_bf16 = jax.block_until_ready(adj_bf16)
    ref_bf16 = _reference_dense(idx, params, alpha, jnp.bfloat16)
    assert jnp.allclose(adj_bf16, ref_bf16, atol=2e-3, rtol=2e-3), \
        "bf16 mismatch vs cast-matched reference"

    # Full default-path forward (bf16 MXU operands).
    out = jax.block_until_ready(graph_constructor_forward(idx, params, k, alpha))
    assert out.shape == (n, n)

    print("KERNEL_OK")
</pallas_src>

<mosaic_0001>
module attributes {stable_mosaic.version = 11 : i64} {
  func.func @_nodevec_kernel(%arg0: i32, %arg1: memref<128x32xf32, #tpu.memory_space<vmem>>, %arg2: memref<128x32xf32, #tpu.memory_space<vmem>>, %arg3: memref<32x32xf32, #tpu.memory_space<vmem>>, %arg4: memref<1x32xf32, #tpu.memory_space<vmem>>, %arg5: memref<32x32xf32, #tpu.memory_space<vmem>>, %arg6: memref<1x32xf32, #tpu.memory_space<vmem>>, %arg7: memref<16x64xf32, #tpu.memory_space<vmem>>, %arg8: memref<64x128xf32, #tpu.memory_space<vmem>>) attributes {dimension_semantics = [#tpu.dimension_semantics<arbitrary>], iteration_bounds = array<i64: 1>, scalar_prefetch = 0 : i64, scratch_operands = 0 : i64, tpu.core_type = #tpu.core_type<tc>, window_params = [{pipeline_mode = #tpu.pipeline_mode<synchronous>, transform_indices = @transform_0, window_bounds = array<i64: 128, 32>}, {pipeline_mode = #tpu.pipeline_mode<synchronous>, transform_indices = @transform_1, window_bounds = array<i64: 128, 32>}, {pipeline_mode = #tpu.pipeline_mode<synchronous>, transform_indices = @transform_2, window_bounds = array<i64: 32, 32>}, {pipeline_mode = #tpu.pipeline_mode<synchronous>, transform_indices = @transform_3, window_bounds = array<i64: 1, 32>}, {pipeline_mode = #tpu.pipeline_mode<synchronous>, transform_indices = @transform_4, window_bounds = array<i64: 32, 32>}, {pipeline_mode = #tpu.pipeline_mode<synchronous>, transform_indices = @transform_5, window_bounds = array<i64: 1, 32>}, {pipeline_mode = #tpu.pipeline_mode<synchronous>, transform_indices = @transform_6, window_bounds = array<i64: 16, 64>}, {pipeline_mode = #tpu.pipeline_mode<synchronous>, transform_indices = @transform_7, window_bounds = array<i64: 64, 128>}]} {
    %c0 = arith.constant 0 : index
    %c0_0 = arith.constant 0 : index
    %0 = vector.load %arg1[%c0, %c0_0] : memref<128x32xf32, #tpu.memory_space<vmem>>, vector<128x32xf32>
    %c0_1 = arith.constant 0 : index
    %c0_2 = arith.constant 0 : index
    %1 = vector.load %arg3[%c0_1, %c0_2] : memref<32x32xf32, #tpu.memory_space<vmem>>, vector<32x32xf32>
    %cst = arith.constant dense<0.000000e+00> : vector<128x32xf32>
    %2 = tpu.matmul %0, %1, %cst {dimension_numbers = #tpu.dot_dimension_numbers<[1], [0], [0], [1], [0, 0, 1, 1], [], []>} : vector<128x32xf32>, vector<32x32xf32>, vector<128x32xf32> -> vector<128x32xf32>
    %c0_3 = arith.constant 0 : index
    %c0_4 = arith.constant 0 : index
    %3 = vector.load %arg4[%c0_3, %c0_4] : memref<1x32xf32, #tpu.memory_space<vmem>>, vector<1x32xf32>
    %4 = vector.broadcast %3 : vector<1x32xf32> to vector<128x32xf32>
    %5 = arith.addf %2, %4 : vector<128x32xf32>
    %c0_5 = arith.constant 0 : index
    %c0_6 = arith.constant 0 : index
    %6 = vector.load %arg2[%c0_5, %c0_6] : memref<128x32xf32, #tpu.memory_space<vmem>>, vector<128x32xf32>
    %c0_7 = arith.constant 0 : index
    %c0_8 = arith.constant 0 : index
    %7 = vector.load %arg5[%c0_7, %c0_8] : memref<32x32xf32, #tpu.memory_space<vmem>>, vector<32x32xf32>
    %cst_9 = arith.constant dense<0.000000e+00> : vector<128x32xf32>
    %8 = tpu.matmul %6, %7, %cst_9 {dimension_numbers = #tpu.dot_dimension_numbers<[1], [0], [0], [1], [0, 0, 1, 1], [], []>} : vector<128x32xf32>, vector<32x32xf32>, vector<128x32xf32> -> vector<128x32xf32>
    %c0_10 = arith.constant 0 : index
    %c0_11 = arith.constant 0 : index
    %9 = vector.load %arg6[%c0_10, %c0_11] : memref<1x32xf32, #tpu.memory_space<vmem>>, vector<1x32xf32>
    %10 = vector.broadcast %9 : vector<1x32xf32> to vector<128x32xf32>
    %11 = arith.addf %8, %10 : vector<128x32xf32>
    %12 = math.tanh %5 : vector<128x32xf32>
    %cst_12 = arith.constant 3.000000e+00 : f32
    %13 = vector.broadcast %cst_12 : f32 to vector<128x32xf32>
    %14 = arith.mulf %13, %12 : vector<128x32xf32>
    %15 = math.tanh %11 : vector<128x32xf32>
    %16 = vector.extract_strided_slice %14 {offsets = [0, 0], sizes = [16, 32], strides = [1, 1]} : vector<128x32xf32> to vector<16x32xf32>
    %17 = vector.extract_strided_slice %15 {offsets = [0, 0], sizes = [16, 32], strides = [1, 1]} : vector<128x32xf32> to vector<16x32xf32>
    %18 = tpu.concatenate %16, %17 in 1 : vector<16x32xf32>, vector<16x32xf32> -> vector<16x64xf32>
    %c0_13 = arith.constant 0 : index
    %c0_14 = arith.constant 0 : index
    %19 = vector.load %arg7[%c0_13, %c0_14] : memref<16x64xf32, #tpu.memory_space<vmem>>, vector<16x64xf32>
    tpu.vector_store %arg7[%c0_13, %c0_14], %18 {strides = array<i32>} : memref<16x64xf32, #tpu.memory_space<vmem>>, vector<16x64xf32>,
    %cst_15 = arith.constant 0.000000e+00 : f32
    %20 = vector.broadcast %cst_15 : f32 to vector<128x32xf32>
    %21 = arith.subf %20, %14 : vector<128x32xf32>
    %22 = tpu.concatenate %15, %21 in 1 : vector<128x32xf32>, vector<128x32xf32> -> vector<128x64xf32>
    %23 = tpu.transpose %22, [1, 0] : vector<128x64xf32> -> vector<64x128xf32>
    %c0_16 = arith.constant 0 : index
    %c0_17 = arith.constant 0 : index
    %24 = vector.load %arg8[%c0_16, %c0_17] : memref<64x128xf32, #tpu.memory_space<vmem>>, vector<64x128xf32>
    tpu.vector_store %arg8[%c0_16, %c0_17], %23 {strides = array<i32>} : memref<64x128xf32, #tpu.memory_space<vmem>>, vector<64x128xf32>,
    return
  }
  func.func @transform_0(%arg0: i32) -> (i32, i32) {
    %c0_i32 = arith.constant 0 : i32
    %c0_i32_0 = arith.constant 0 : i32
    %c0_i32_1 = arith.constant 0 : i32
    return %c0_i32, %c0_i32_0 : i32, i32
  }
  func.func @transform_1(%arg0: i32) -> (i32, i32) {
    %c0_i32 = arith.constant 0 : i32
    %c0_i32_0 = arith.constant 0 : i32
    %c0_i32_1 = arith.constant 0 : i32
    return %c0_i32, %c0_i32_0 : i32, i32
  }
  func.func @transform_2(%arg0: i32) -> (i32, i32) {
    %c0_i32 = arith.constant 0 : i32
    %c0_i32_0 = arith.constant 0 : i32
    %c0_i32_1 = arith.constant 0 : i32
    return %c0_i32, %c0_i32_0 : i32, i32
  }
  func.func @transform_3(%arg0: i32) -> (i32, i32) {
    %c0_i32 = arith.constant 0 : i32
    %c0_i32_0 = arith.constant 0 : i32
    %c0_i32_1 = arith.constant 0 : i32
    return %c0_i32, %c0_i32_0 : i32, i32
  }
  func.func @transform_4(%arg0: i32) -> (i32, i32) {
    %c0_i32 = arith.constant 0 : i32
    %c0_i32_0 = arith.constant 0 : i32
    %c0_i32_1 = arith.constant 0 : i32
    return %c0_i32, %c0_i32_0 : i32, i32
  }
  func.func @transform_5(%arg0: i32) -> (i32, i32) {
    %c0_i32 = arith.constant 0 : i32
    %c0_i32_0 = arith.constant 0 : i32
    %c0_i32_1 = arith.constant 0 : i32
    return %c0_i32, %c0_i32_0 : i32, i32
  }
  func.func @transform_6(%arg0: i32) -> (i32, i32) {
    %c0_i32 = arith.constant 0 : i32
    %c0_i32_0 = arith.constant 0 : i32
    %c0_i32_1 = arith.constant 0 : i32
    return %c0_i32, %c0_i32_0 : i32, i32
  }
  func.func @transform_7(%arg0: i32) -> (i32, i32) {
    %c0_i32 = arith.constant 0 : i32
    %c0_i32_0 = arith.constant 0 : i32
    %c0_i32_1 = arith.constant 0 : i32
    return %c0_i32, %c0_i32_0 : i32, i32
  }
}

</mosaic_0001>

<bundles_post_ra>
// kernel: tpu_custom_call.1
= control target key start
LH: loop header
LB: loop body
LE: loop exit
PB: predicated region body
PF: predicated region fallthrough
CT: control target
= control target key end

     0   :  { %13 = vsyncpa [#allocation3], 0  ;;  %s998_s0 = inlined_call_operand.vmem [shape: f32[128,32], index: 0, kind: input, shape index: {}]   ;;  %s999_s1 = inlined_call_operand.vmem [shape: f32[128,32], index: 1, kind: input, shape index: {}]   ;;  %s1000_s2 = inlined_call_operand.vmem [shape: f32[32,32], index: 2, kind: input, shape index: {}]   ;;  %s1001_s3 = inlined_call_operand.vmem [shape: f32[1,32], index: 3, kind: input, shape index: {}]   ;;  %s1002_s4 = inlined_call_operand.vmem [shape: f32[32,32], index: 4, kind: input, shape index: {}]   ;;  %s1003_s5 = inlined_call_operand.vmem [shape: f32[1,32], index: 5, kind: input, shape index: {}]   ;;  %s1004_s6 = inlined_call_operand.hbm [shape: f32[16,64], index: 6, kind: output, shape index: {0}]   ;;  %s1005_s7 = inlined_call_operand.hbm [shape: f32[64,128], index: 7, kind: output, shape index: {1}]  }
   0x1   :  { %v46_v0 = vld [vmem:[%s1000_s2 + $0x18] sm:$0xff]  ;;  %v45_v1 = vld [vmem:[%s1000_s2 + $0x10] sm:$0xff]  ;;  %v44_v2 = vld [vmem:[%s1000_s2 + $0x8] sm:$0xff] }
   0x2   :  { %112 = vmatpush.msra.mxu0 %v46_v0  ;;  %567 = vmatpush.msra.mxu2 %v46_v0  ;;  %v43_v3 = vld [vmem:[%s1000_s2] sm:$0xff] }
   0x4   :  { %113 = vmatpush.msra.mxu0 %v45_v1  ;;  %568 = vmatpush.msra.mxu2 %v45_v1 }
   0x5   :  { %14 = vsyncpa [#allocation5], 0  ;;  %v27_v4 = vld [vmem:[%s998_s0] sm:$0xff]  ;;  %vm51_vm0 = vcmask 261120   ;;  %v28_v6 = vld [vmem:[%s998_s0 + $0x8] sm:$0xff]  ;;  %s698_s26 = smov 32  }
   0x6   :  { %114 = vmatpush.msra.mxu0 %v44_v2  ;;  %569 = vmatpush.msra.mxu2 %v44_v2  ;;  %v35_v5 = vld [vmem:[%s998_s0 + $0x40] sm:$0xff]  ;;  %v36_v7 = vld [vmem:[%s998_s0 + $0x48] sm:$0xff]  ;;  %v29_v8 = vld [vmem:[%s998_s0 + $0x10] sm:$0xff]  ;;  %vm360_vm1 = vcmask 523264   ;;  %s505_s12 = sshll.u32 %s1004_s6, 4  ;;  %s700_s2 = smov 128   ;;  %s506_s12 = int_to_ptr.hbm [resolvable:$true] %s505_s12 }
   0x7   :  { %v37_v9 = vld [vmem:[%s998_s0 + $0x50] sm:$0xff]  ;;  %v30_v10 = vld [vmem:[%s998_s0 + $0x18] sm:$0xff]  ;;  %v182_v14 = vld [vmem:[%s1002_s4 + $0x8] sm:$0xff]  ;;  %s701_s13 = smov 8   ;;  %s702_s6 = smov [#allocation4]  }
   0x8   :  { %115 = vmatpush.msra.mxu0 %v43_v3  ;;  %570 = vmatpush.msra.mxu2 %v43_v3  ;;  %v38_v11 = vld [vmem:[%s998_s0 + $0x58] sm:$0xff]  ;;  %v183_v13 = vld [vmem:[%s1002_s4 + $0x10] sm:$0xff]  ;;  %v181_v15 = vld [vmem:[%s1002_s4] sm:$0xff]  ;;  %s516_s14 = sshll.u32 %s702_s6, 4  ;;  %s517_s14 = int_to_ptr.vmem [resolvable:$true] %s516_s14 }
   0x9   :  { %535 = vmatmul.msk.f32.vlgmr.msra.gmra.mxu0 %vm51_vm0, %v27_v4  ;;  %543 = vmatmul.msk.f32.vlgmr.msra.gmra.mxu2 %vm51_vm0, %v35_v5  ;;  %v184_v12 = vld [vmem:[%s1002_s4 + $0x18] sm:$0xff]  ;;  %v31_v16 = vld [vmem:[%s998_s0 + $0x20] sm:$0xff]  ;;  %v32_v20 = vld [vmem:[%s998_s0 + $0x28] sm:$0xff]  ;;  %s518_s4 = sshll.u32 %s1005_s7, 4  ;;  %s519_s4 = int_to_ptr.hbm [resolvable:$true] %s518_s4 }
   0xa   :  { %249 = vmatpush.msra.mxu1 %v184_v12  ;;  %571 = vmatpush.msra.mxu3 %v184_v12  ;;  %v39_v17 = vld [vmem:[%s998_s0 + $0x60] sm:$0xff]  ;;  %v40_v21 = vld [vmem:[%s998_s0 + $0x68] sm:$0xff]  ;;  %v33_v24 = vld [vmem:[%s998_s0 + $0x30] sm:$0xff] }
   0xb   :  { %v165_v18 = vld [vmem:[%s999_s1] sm:$0xff]  ;;  %v166_v22 = vld [vmem:[%s999_s1 + $0x8] sm:$0xff]  ;;  %v41_v25 = vld [vmem:[%s998_s0 + $0x70] sm:$0xff] }
   0xc   :  { %250 = vmatpush.msra.mxu1 %v183_v13  ;;  %572 = vmatpush.msra.mxu3 %v183_v13  ;;  %v173_v19 = vld [vmem:[%s999_s1 + $0x40] sm:$0xff]  ;;  %v174_v23 = vld [vmem:[%s999_s1 + $0x48] sm:$0xff]  ;;  %v167_v26 = vld [vmem:[%s999_s1 + $0x10] sm:$0xff] }
   0xd   :  { %v34_v27 = vld [vmem:[%s998_s0 + $0x38] sm:$0xff]  ;;  %v169_v30 = vld [vmem:[%s999_s1 + $0x20] sm:$0xff]  ;;  %v175_v31 = vld [vmem:[%s999_s1 + $0x50] sm:$0xff] }
   0xe   :  { %251 = vmatpush.msra.mxu1 %v182_v14  ;;  %573 = vmatpush.msra.mxu3 %v182_v14  ;;  %v42_v28 = vld [vmem:[%s998_s0 + $0x78] sm:$0xff]  ;;  %v170_v32 = vld [vmem:[%s999_s1 + $0x28] sm:$0xff]  ;;  %v177_v34 = vld [vmem:[%s999_s1 + $0x60] sm:$0xff] }
   0xf   :  { %v168_v29 = vld [vmem:[%s999_s1 + $0x18] sm:$0xff]  ;;  %v878_v35 = vld [vmem:[%s1001_s3] ss:$0 sm:$0xff]  ;;  %v178_v36 = vld [vmem:[%s999_s1 + $0x68] sm:$0xff] }
  0x10   :  { %252 = vmatpush.msra.mxu1 %v181_v15  ;;  %574 = vmatpush.msra.mxu3 %v181_v15  ;;  %v176_v33 = vld [vmem:[%s999_s1 + $0x58] sm:$0xff]  ;;  %v179_v39 = vld [vmem:[%s999_s1 + $0x70] sm:$0xff] }
  0x11   :  { %536 = vmatmul.msk.f32.gmra.mxu0 %vm51_vm0, %v28_v6  ;;  %544 = vmatmul.msk.f32.gmra.mxu2 %vm51_vm0, %v36_v7  ;;  %v171_v44 = vld [vmem:[%s999_s1 + $0x30] sm:$0xff]  ;;  %v172_v51 = vld [vmem:[%s999_s1 + $0x38] sm:$0xff] }
  0x12   :  { %551 = vmatmul.msk.f32.vlgmr.msra.gmra.mxu1 %vm51_vm0, %v165_v18  ;;  %559 = vmatmul.msk.f32.vlgmr.msra.gmra.mxu3 %vm51_vm0, %v173_v19  ;;  %v180_v2 = vld [vmem:[%s999_s1 + $0x78] sm:$0xff] }
  0x19   :  { %537 = vmatmul.msk.f32.gmra.mxu0 %vm51_vm0, %v29_v8  ;;  %545 = vmatmul.msk.f32.gmra.mxu2 %vm51_vm0, %v37_v9 }
  0x1a   :  { %552 = vmatmul.msk.f32.gmra.mxu1 %vm51_vm0, %v166_v22  ;;  %560 = vmatmul.msk.f32.gmra.mxu3 %vm51_vm0, %v174_v23 }
  0x21   :  { %538 = vmatmul.msk.f32.gmra.mxu0 %vm51_vm0, %v30_v10  ;;  %546 = vmatmul.msk.f32.gmra.mxu2 %vm51_vm0, %v38_v11 }
  0x22   :  { %553 = vmatmul.msk.f32.gmra.mxu1 %vm51_vm0, %v167_v26  ;;  %561 = vmatmul.msk.f32.gmra.mxu3 %vm51_vm0, %v175_v31 }
  0x29   :  { %539 = vmatmul.msk.f32.gmra.mxu0 %vm51_vm0, %v31_v16  ;;  %547 = vmatmul.msk.f32.gmra.mxu2 %vm51_vm0, %v39_v17 }
  0x2a   :  { %554 = vmatmul.msk.f32.gmra.mxu1 %vm51_vm0, %v168_v29  ;;  %562 = vmatmul.msk.f32.gmra.mxu3 %vm51_vm0, %v176_v33 }
  0x31   :  { %540 = vmatmul.msk.f32.gmra.mxu0 %vm51_vm0, %v32_v20  ;;  %548 = vmatmul.msk.f32.gmra.mxu2 %vm51_vm0, %v40_v21 }
  0x32   :  { %555 = vmatmul.msk.f32.gmra.mxu1 %vm51_vm0, %v169_v30  ;;  %563 = vmatmul.msk.f32.gmra.mxu3 %vm51_vm0, %v177_v34 }
  0x39   :  { %541 = vmatmul.msk.f32.gmra.mxu0 %vm51_vm0, %v33_v24  ;;  %549 = vmatmul.msk.f32.gmra.mxu2 %vm51_vm0, %v41_v25 }
  0x3a   :  { %556 = vmatmul.msk.f32.gmra.mxu1 %vm51_vm0, %v170_v32  ;;  %564 = vmatmul.msk.f32.gmra.mxu3 %vm51_vm0, %v178_v36 }
  0x41   :  { %542 = vmatmul.msk.f32.gmra.mxu0 %vm51_vm0, %v34_v27  ;;  %550 = vmatmul.msk.f32.gmra.mxu2 %vm51_vm0, %v42_v28 }
  0x42   :  { %565 = vmatmul.msk.f32.gmra.mxu3 %vm51_vm0, %v179_v39  ;;  %557 = vmatmul.msk.f32.gmra.mxu1 %vm51_vm0, %v171_v44 }
  0x4a   :  { %558 = vmatmul.msk.f32.gmra.mxu1 %vm51_vm0, %v172_v51  ;;  %566 = vmatmul.msk.f32.gmra.mxu3 %vm51_vm0, %v180_v2 }
  0x86   :  { %v117_v37 = vpop.f32.mrf.mxu0 }
  0x87   :  { %v118_v38 = vadd.f32 %v878_v35, %v117_v37 }
  0x89   :  { %582 = vtanh.f32 %v118_v38 }
  0x8c   :  { %v141_v40 = vpop.f32.mrf.mxu2 }
  0x8d   :  { %v142_v8 = vadd.f32 %v878_v35, %v141_v40 }
  0x8e   :  { %v120_v41 = vpop.f32.mrf.mxu0 }
  0x8f   :  { %v583_v42 = vpop.eup %582  ;;  %v121_v43 = vadd.f32 %v878_v35, %v120_v41  ;;  %v254_v30 = vpop.f32.mrf.mxu1 }
  0x90   :  { %v893_v45 = vmul.f32 3.0, %v583_v42 }
  0x91   :  { %584 = vtanh.f32 %v121_v43 }
  0x92   :  { %v363_v46 = vsub.f32 0.0, %v893_v45 }
  0x94   :  { %395 = vrot.lane.b32.xlu0 %v363_v46, %s698_s26  ;;  %v144_v47 = vpop.f32.mrf.mxu2 }
  0x95   :  { %v145_v16 = vadd.f32 %v878_v35, %v144_v47  ;;  %v933_v47 = vld [vmem:[%s1003_s5] ss:$0 sm:$0xff]  ;;  %s699_s5 = smov [#allocation2]  }
  0x96   :  { %v123_v48 = vpop.f32.mrf.mxu0  ;;  %s503_s9 = sshll.u32 %s699_s5, 4  ;;  %s504_s9 = int_to_ptr.vmem [resolvable:$true] %s503_s9 }
  0x97   :  { %v585_v49 = vpop.eup %584  ;;  %v124_v50 = vadd.f32 %v878_v35, %v123_v48 }
  0x98   :  { %v902_v52 = vmul.f32 3.0, %v585_v49 }
  0x99   :  { %586 = vtanh.f32 %v124_v50  ;;  %v257_v50 = vpop.f32.mrf.mxu1 }
  0x9a   :  { %v364_v53 = vsub.f32 0.0, %v902_v52 }
  0x9c   :  { %397 = vrot.lane.b32.xlu0 %v364_v53, %s698_s26  ;;  %v147_v54 = vpop.f32.mrf.mxu2  ;;  %v258_v53 = vadd.f32 %v933_v47, %v257_v50 }
  0x9d   :  { %v148_v26 = vadd.f32 %v878_v35, %v147_v54 }
  0x9e   :  { %v126_v55 = vpop.f32.mrf.mxu0 }
  0x9f   :  { %v587_v56 = vpop.eup %586  ;;  %v127_v57 = vadd.f32 %v878_v35, %v126_v55 }
  0xa0   :  { %v320_v58 = vmul.f32 3.0, %v587_v56 }
  0xa1   :  { %588 = vtanh.f32 %v127_v57  ;;  %v260_v2 = vpop.f32.mrf.mxu1 }
  0xa2   :  { %v365_v59 = vsub.f32 0.0, %v320_v58 }
  0xa4   :  { %399 = vrot.lane.b32.xlu1 %v365_v59, %s698_s26  ;;  %v150_v60 = vpop.f32.mrf.mxu2 }
  0xa5   :  { %v151_v15 = vadd.f32 %v878_v35, %v150_v60 }
  0xa6   :  { %v129_v61 = vpop.f32.mrf.mxu0 }
  0xa7   :  { %v589_v62 = vpop.eup %588  ;;  %v130_v63 = vadd.f32 %v878_v35, %v129_v61  ;;  %v255_v61 = vadd.f32 %v933_v47, %v254_v30 }
  0xa8   :  { %v321_v0 = vmul.f32 3.0, %v589_v62 }
  0xa9   :  { %590 = vtanh.f32 %v130_v63 }
  0xaa   :  { %v366_v1 = vsub.f32 0.0, %v321_v0 }
  0xac   :  { %401 = vrot.lane.b32.xlu1 %v366_v1, %s698_s26  ;;  %v153_v3 = vpop.f32.mrf.mxu2 }
  0xad   :  { %v154_v29 = vadd.f32 %v878_v35, %v153_v3 }
  0xae   :  { %v132_v4 = vpop.f32.mrf.mxu0 }
  0xaf   :  { %v591_v5 = vpop.eup %590  ;;  %v133_v6 = vadd.f32 %v878_v35, %v132_v4 }
  0xb0   :  { %v322_v7 = vmul.f32 3.0, %v591_v5  ;;  %v263_v5 = vpop.f32.mrf.mxu1 }
  0xb1   :  { %592 = vtanh.f32 %v133_v6  ;;  %v261_v6 = vadd.f32 %v933_v47, %v260_v2 }
  0xb2   :  { %v367_v9 = vsub.f32 0.0, %v322_v7  ;;  %594 = vtanh.f32 %v142_v8 }
  0xb4   :  { %403 = vrot.lane.b32.xlu2 %v367_v9, %s698_s26  ;;  %v156_v10 = vpop.f32.mrf.mxu2 }
  0xb5   :  { %v157_v41 = vadd.f32 %v878_v35, %v156_v10  ;;  %v264_v10 = vadd.f32 %v933_v47, %v263_v5 }
  0xb6   :  { %v135_v11 = vpop.f32.mrf.mxu0 }
  0xb7   :  { %v593_v12 = vpop.eup %592  ;;  %v136_v13 = vadd.f32 %v878_v35, %v135_v11 }
  0xb8   :  { %v323_v14 = vmul.f32 3.0, %v593_v12  ;;  %v595_v18 = vpop.eup %594  ;;  %v266_v11 = vpop.f32.mrf.mxu1 }
  0xb9   :  { %596 = vtanh.f32 %v136_v13  ;;  %v326_v20 = vmul.f32 3.0, %v595_v18 }
  0xba   :  { %v368_v17 = vsub.f32 0.0, %v323_v14  ;;  %598 = vtanh.f32 %v151_v15 }
  0xbb   :  { %600 = vtanh.f32 %v145_v16  ;;  %v371_v27 = vsub.f32 0.0, %v326_v20  ;;  %v267_v16 = vadd.f32 %v933_v47, %v266_v11 }
  0xbc   :  { %405 = vrot.lane.b32.xlu2 %v368_v17, %s698_s26  ;;  %v159_v19 = vpop.f32.mrf.mxu2 }
  0xbd   :  { %v160_v24 = vadd.f32 %v878_v35, %v159_v19 }
  0xbe   :  { %v138_v21 = vpop.f32.mrf.mxu0 }
  0xbf   :  { %v597_v22 = vpop.eup %596  ;;  %v139_v23 = vadd.f32 %v878_v35, %v138_v21 }
  0xc0   :  { %v324_v25 = vmul.f32 3.0, %v597_v22  ;;  %v599_v31 = vpop.eup %598  ;;  %v269_v18 = vpop.f32.mrf.mxu1 }
  0xc1   :  { %602 = vtanh.f32 %v139_v23  ;;  %v601_v32 = vpop.eup %600  ;;  %v329_v34 = vmul.f32 3.0, %v599_v31  ;;  %v270_v22 = vadd.f32 %v933_v47, %v269_v18 }
  0xc2   :  { %v369_v28 = vsub.f32 0.0, %v324_v25  ;;  %604 = vtanh.f32 %v160_v24  ;;  %v327_v37 = vmul.f32 3.0, %v601_v32 }
  0xc3   :  { %606 = vtanh.f32 %v148_v26  ;;  %v374_v42 = vsub.f32 0.0, %v329_v34 }
  0xc4   :  { %411 = vrot.lane.b32.xlu2 %v371_v27, %s698_s26  ;;  %407 = vrot.lane.b32.xlu0 %v369_v28, %s698_s26  ;;  %v162_v33 = vpop.f32.mrf.mxu2  ;;  %608 = vtanh.f32 %v154_v29  ;;  %v372_v46 = vsub.f32 0.0, %v327_v37  ;;  %v278_v28 = vpop.f32.mrf.mxu3 }
  0xc5   :  { %v163_v39 = vadd.f32 %v878_v35, %v162_v33 }
  0xc7   :  { %v603_v36 = vpop.eup %602  ;;  %610 = vtanh.f32 %v163_v39 }
  0xc8   :  { %v325_v38 = vmul.f32 3.0, %v603_v36  ;;  %v605_v40 = vpop.eup %604  ;;  %612 = vtanh.f32 %v157_v41  ;;  %v272_v24 = vpop.f32.mrf.mxu1  ;;  %v279_v41 = vadd.f32 %v933_v47, %v278_v28 }
  0xc9   :  { %v607_v44 = vpop.eup %606  ;;  %v332_v49 = vmul.f32 3.0, %v605_v40  ;;  %614 = vtanh.f32 %v258_v53  ;;  %v273_v27 = vadd.f32 %v933_v47, %v272_v24 }
  0xca   :  { %v370_v43 = vsub.f32 0.0, %v325_v38  ;;  %v609_v48 = vpop.eup %608  ;;  %v328_v35 = vmul.f32 3.0, %v607_v44  ;;  %616 = vtanh.f32 %v255_v61 }
  0xcb   :  { %v330_v51 = vmul.f32 3.0, %v609_v48  ;;  %v377_v54 = vsub.f32 0.0, %v332_v49  ;;  %618 = vtanh.f32 %v261_v6 }
  0xcc   :  { %417 = vrot.lane.b32.xlu2 %v374_v42, %s698_s26  ;;  %409 = vrot.lane.b32.xlu1 %v370_v43, %s698_s26  ;;  %v373_v56 = vsub.f32 0.0, %v328_v35  ;;  %620 = vtanh.f32 %v264_v10  ;;  %v281_v36 = vpop.f32.mrf.mxu3 }
  0xcd   :  { %413 = vrot.lane.b32.xlu0 %v372_v46, %s698_s26  ;;  %v611_v55 = vpop.eup %610  ;;  %v375_v58 = vsub.f32 0.0, %v330_v51  ;;  %622 = vtanh.f32 %v267_v16  ;;  %v282_v48 = vadd.f32 %v933_v47, %v281_v36 }
  0xce   :  { %v613_v57 = vpop.eup %612  ;;  %v333_v59 = vmul.f32 3.0, %v611_v55  ;;  %624 = vtanh.f32 %v270_v22 }
  0xcf   :  { %v331_v60 = vmul.f32 3.0, %v613_v57  ;;  %v615_v62 = vpop.eup %614  ;;  %626 = vtanh.f32 %v273_v27 }
  0xd0   :  { %v378_v63 = vsub.f32 0.0, %v333_v59  ;;  %v617_v1 = vpop.eup %616  ;;  %v275_v32 = vpop.f32.mrf.mxu1 }
  0xd1   :  { %v376_v0 = vsub.f32 0.0, %v331_v60  ;;  %v619_v12 = vpop.eup %618  ;;  %v276_v33 = vadd.f32 %v933_v47, %v275_v32 }
  0xd2   :  { %v621_v17 = vpop.eup %620 }
  0xd3   :  { %v623_v23 = vpop.eup %622  ;;  %628 = vtanh.f32 %v276_v33 }
  0xd4   :  { %423 = vrot.lane.b32.xlu2 %v377_v54, %s698_s26  ;;  %415 = vrot.lane.b32.xlu1 %v373_v56, %s698_s26  ;;  %v625_v29 = vpop.eup %624  ;;  %630 = vtanh.f32 %v279_v41  ;;  %v284_v44 = vpop.f32.mrf.mxu3 }
  0xd5   :  { %419 = vrot.lane.b32.xlu0 %v375_v58, %s698_s26  ;;  %v627_v34 = vpop.eup %626  ;;  %632 = vtanh.f32 %v282_v48  ;;  %v285_v51 = vadd.f32 %v933_v47, %v284_v44 }
  0xd7   :  { %634 = vtanh.f32 %v285_v51 }
  0xd9   :  { %v629_v42 = vpop.eup %628 }
  0xda   :  { %v631_v49 = vpop.eup %630 }
  0xdb   :  { %v633_v53 = vpop.eup %632 }
  0xdc   :  { %354 = vrot.lane.b32.xlu2 %v615_v62, %s698_s26  ;;  %421 = vrot.lane.b32.xlu1 %v376_v0, %s698_s26  ;;  %v287_v35 = vpop.f32.mrf.mxu3 }
  0xdd   :  { %425 = vrot.lane.b32.xlu0 %v378_v63, %s698_s26  ;;  %v288_v57 = vadd.f32 %v933_v47, %v287_v35  ;;  %v635_v59 = vpop.eup %634 }
  0xdf   :  { %636 = vtanh.f32 %v288_v57 }
  0xe4   :  { %352 = vrot.lane.b32.xlu1 %v617_v1, %s698_s26  ;;  %v290_v58 = vpop.f32.mrf.mxu3 }
  0xe5   :  { %v291_v63 = vadd.f32 %v933_v47, %v290_v58  ;;  %v637_v0 = vpop.eup %636 }
  0xe7   :  { %638 = vtanh.f32 %v291_v63 }
 0x106   :  { %v396_v3 = vpop.permute.xlu0 %395 }
 0x107   :  { %v443_v4 = vsel %vm51_vm0, %v617_v1, %v396_v3  ;;  %v293_v1 = vpop.f32.mrf.mxu3 }
 0x108   :  { %459 = vxpose.xlu0.b32.start [1/16] (narrow) %v443_v4, 64  ;;  %v294_v3 = vadd.f32 %v933_v47, %v293_v1  ;;  %v639_v4 = vpop.eup %638 }
 0x10a   :  { %640 = vtanh.f32 %v294_v3 }
 0x10e   :  { %v404_v7 = vpop.permute.xlu2 %403  ;;  %v398_v8 = vpop.permute.xlu0 %397 }
 0x10f   :  { %v444_v9 = vsel %vm51_vm0, %v615_v62, %v398_v8  ;;  %v447_v26 = vsel %vm51_vm0, %v623_v23, %v404_v7 }
 0x110   :  { %460 = vxpose.xlu0.b32.cont [2/16] (narrow) %v444_v9, 64  ;;  %v641_v8 = vpop.eup %640 }
 0x116   :  { %v406_v13 = vpop.permute.xlu2 %405  ;;  %v400_v14 = vpop.permute.xlu1 %399 }
 0x117   :  { %v445_v15 = vsel %vm51_vm0, %v619_v12, %v400_v14  ;;  %v448_v31 = vsel %vm51_vm0, %v625_v29, %v406_v13 }
 0x118   :  { %461 = vxpose.xlu0.b32.cont [3/16] (narrow) %v445_v15, 64 }
 0x11e   :  { %v412_v19 = vpop.permute.xlu2 %411  ;;  %v402_v20 = vpop.permute.xlu1 %401 }
 0x11f   :  { %v446_v21 = vsel %vm51_vm0, %v621_v17, %v402_v20 }
 0x120   :  { %462 = vxpose.xlu0.b32.cont [4/16] (narrow) %v446_v21, 64 }
 0x126   :  { %v418_v25 = vpop.permute.xlu2 %417 }
 0x127   :  { %v454_v2 = vsel %vm51_vm0, %v637_v0, %v418_v25 }
 0x128   :  { %463 = vxpose.xlu0.b32.cont [5/16] (narrow) %v447_v26, 64 }
 0x12e   :  { %v957_v30 = vpop.permute.xlu2 %423 }
 0x130   :  { %464 = vxpose.xlu0.b32.cont [6/16] (narrow) %v448_v31, 64 }
 0x136   :  { %v355_v37 = vpop.permute.xlu2 %354  ;;  %v408_v38 = vpop.permute.xlu0 %407 }
 0x137   :  { %v359_v39 = vsel %vm51_vm0, %v902_v52, %v355_v37  ;;  %v449_v40 = vsel %vm51_vm0, %v627_v34, %v408_v38  ;;  %v451_v52 = vsel %vm51_vm0, %v631_v49, %v412_v19 }
 0x138   :  { %362 = vst.msk [vmem:[#allocation2 + $0x8] sm:$0xff] %vm360_vm1, %v359_v39  ;;  %465 = vxpose.xlu0.b32.cont [7/16] (narrow) %v449_v40, 64 }
 0x13e   :  { %v410_v43 = vpop.permute.xlu1 %409 }
 0x13f   :  { %v450_v46 = vsel %vm51_vm0, %v629_v42, %v410_v43  ;;  %v414_v54 = vpop.permute.xlu0 %413 }
 0x140   :  { %466 = vxpose.xlu0.b32.cont [8/16] (narrow) %v450_v46, 64  ;;  %v452_v56 = vsel %vm51_vm0, %v633_v53, %v414_v54 }
 0x146   :  { %v416_v50 = vpop.permute.xlu1 %415 }
 0x147   :  { %v453_v62 = vsel %vm51_vm0, %v635_v59, %v416_v50  ;;  %v420_v5 = vpop.permute.xlu0 %419 }
 0x148   :  { %467 = vxpose.xlu0.b32.cont [9/16] (narrow) %v451_v52, 64  ;;  %v455_v6 = vsel %vm51_vm0, %v639_v4, %v420_v5 }
 0x14e   :  { %v422_v55 = vpop.permute.xlu1 %421 }
 0x14f   :  { %v456_v10 = vsel %vm51_vm0, %v641_v8, %v422_v55  ;;  %v426_v15 = vpop.permute.xlu0 %425 }
 0x150   :  { %468 = vxpose.xlu0.b32.cont [10/16] (narrow) %v452_v56, 64 }
 0x156   :  { %v353_v60 = vpop.permute.xlu1 %352 }
 0x157   :  { %v358_v61 = vsel %vm51_vm0, %v893_v45, %v353_v60  ;;  %v296_v45 = vpop.f32.mrf.mxu3 }
 0x158   :  { %361 = vst.msk [vmem:[#allocation2] sm:$0xff] %vm360_vm1, %v358_v61  ;;  %469 = vxpose.xlu0.b32.cont [11/16] (narrow) %v453_v62, 64  ;;  %v297_v7 = vadd.f32 %v933_v47, %v296_v45 }
 0x159   :  { %511 = dma.vmem_to_hbm [thread:$0]  %s504_s9, 256, %s506_s12, [#allocation3], %s700_s2, %s700_s2, %s701_s13  }
 0x15a   :  { %642 = vtanh.f32 %v297_v7 }
 0x15f   :  { %v299_v9 = vpop.f32.mrf.mxu3 }
 0x160   :  { %470 = vxpose.xlu0.b32.cont [12/16] (narrow) %v454_v2, 64  ;;  %v300_v11 = vadd.f32 %v933_v47, %v299_v9  ;;  %v643_v12 = vpop.eup %642 }
 0x161   :  { %v457_v13 = vsel %vm51_vm0, %v643_v12, %v957_v30 }
 0x162   :  { %644 = vtanh.f32 %v300_v11 }
 0x168   :  { %471 = vxpose.xlu0.b32.cont [13/16] (narrow) %v455_v6, 64  ;;  %v645_v14 = vpop.eup %644 }
 0x169   :  { %v458_v16 = vsel %vm51_vm0, %v645_v14, %v426_v15 }
 0x170   :  { %472 = vxpose.xlu0.b32.cont [14/16] (narrow) %v456_v10, 64 }
 0x178   :  { %473 = vxpose.xlu0.b32.cont [15/16] (narrow) %v457_v13, 64 }
 0x180   :  { %474 = vxpose.xlu0.b32.end [16/16] (narrow) %v458_v16, 64 }
 0x1ac   :  { %v475_v17 = vpop.trf.xlu0 }
 0x1ad   :  { %491 = vst [vmem:[#allocation4] sm:$0xff] %v475_v17 }
 0x1b4   :  { %v476_v18 = vpop.trf.xlu0 }
 0x1b5   :  { %492 = vst [vmem:[#allocation4 + $0x8] sm:$0xff] %v476_v18 }
 0x1bc   :  { %v477_v19 = vpop.trf.xlu0 }
 0x1bd   :  { %493 = vst [vmem:[#allocation4 + $0x10] sm:$0xff] %v477_v19 }
 0x1c4   :  { %v478_v20 = vpop.trf.xlu0 }
 0x1c5   :  { %494 = vst [vmem:[#allocation4 + $0x18] sm:$0xff] %v478_v20 }
 0x1cc   :  { %v479_v47 = vpop.trf.xlu0 }
 0x1cd   :  { %495 = vst [vmem:[#allocation4 + $0x20] sm:$0xff] %v479_v47 }
 0x1d4   :  { %v480_v21 = vpop.trf.xlu0 }
 0x1d5   :  { %496 = vst [vmem:[#allocation4 + $0x28] sm:$0xff] %v480_v21 }
 0x1dc   :  { %v481_v22 = vpop.trf.xlu0 }
 0x1dd   :  { %497 = vst [vmem:[#allocation4 + $0x30] sm:$0xff] %v481_v22 }
 0x1e4   :  { %v482_v23 = vpop.trf.xlu0 }
 0x1e5   :  { %498 = vst [vmem:[#allocation4 + $0x38] sm:$0xff] %v482_v23 }
 0x1e6   :  { %524 = dma.vmem_to_hbm [thread:$0]  %s517_s14, 1024, %s519_s4, [#allocation5], %s700_s2, %s700_s2, %s701_s13  }
 0x1e7   :  { %694 = dma.done.wait [#allocation3], 256  }
 0x1e8   :  { %695 = vsyncadd [#allocation3], 4294967040 }
 0x1e9   :  { %696 = dma.done.wait [#allocation5], 1024  }
 0x1ea   :  { %697 = vsyncadd [#allocation5], 4294966272 }
 0x1eb   :  { %533 = vsyncpa [#allocation3], 1 }
 0x1ec   :  { %534 = vsyncpa [#allocation5], 1 }

</bundles_post_ra>
